<compile_context>
chip_gen: v6e
topology: v6e:2x2x1
jax: 0.10.0
libtpu: 0.0.40
codegen_flags: <defaults>
</compile_context>

<pallas_src>
import functools

import numpy as np

import jax
import jax.numpy as jnp
from jax.experimental import pallas as pl
from jax.experimental.pallas import tpu as pltpu

K = 7                      # conv kernel size
PAD = (K - 1) // 2         # = 3
LANES = 128


def _round_up(v, m):
    return (v + m - 1) // m * m


# ----------------------------------------------------------------------------
# Host-side precomputation
# ----------------------------------------------------------------------------
def _build_toeplitz(w2, H, W, HWp):
    """Banded, border-masked Toeplitz matrix for the 7x7 'same' conv (2->1 ch).

    conv_flat = concat([cmax_flat, cmean_flat], -1) @ T,  T: (2*HWp, HWp) f32.
    Rows/columns beyond H*W (lane padding) stay zero.  BN scale already folded
    into w2.
    """
    T = np.zeros((2 * HWp, HWp), dtype=np.float32)
    for dy in range(K):
        oy = dy - PAD
        for dx in range(K):
            ox = dx - PAD
            c0, c1 = max(0, -ox), min(W, W - ox)
            if c0 >= c1:
                continue
            cols = np.arange(c0, c1)
            for r in range(max(0, -oy), min(H, H - oy)):
                out_idx = r * W + cols
                src_idx = out_idx + oy * W + ox
                T[src_idx, out_idx] += w2[0, dy, dx]
                T[HWp + src_idx, out_idx] += w2[1, dy, dx]
    return T


def _build_masks(H, W, HWp):
    """Per-offset column / row validity masks over the 128-padded flat axis."""
    pix = np.arange(HWp)
    valid = pix < H * W
    prow, pcol = pix // W, pix % W
    colm = np.zeros((K, 1, HWp), np.float32)
    rowm = np.zeros((K, 1, HWp), np.float32)
    for d in range(K):
        o = d - PAD
        colm[d, 0] = (valid & (pcol + o >= 0) & (pcol + o < W)).astype(np.float32)
        rowm[d, 0] = (valid & (prow + o >= 0) & (prow + o < H)).astype(np.float32)
    return colm, rowm


# ----------------------------------------------------------------------------
# Kernels
# ----------------------------------------------------------------------------
def _spatial_gate2_matmul_kernel(x_ref, t_ref, bn_ref, o_ref, *, C):
    """Small-map path: border-masked 7x7 conv as ONE MXU Toeplitz matmul.

    x_ref/o_ref: (Bt, C, HWp) VMEM; t_ref: (2*HWp, HWp) VMEM (grid-constant,
    BN scale folded in); bn_ref: (1,) SMEM folded BatchNorm shift.
    """
    x = x_ref[...]                                              # input dtype
    cmax = jnp.max(x, axis=1).astype(jnp.float32)               # (Bt, HWp)
    cmean = jnp.sum(x, axis=1, dtype=jnp.float32) * (1.0 / C)   # (Bt, HWp)
    pooled = jnp.concatenate([cmax, cmean], axis=-1)            # (Bt, 2*HWp)
    conv = jnp.dot(pooled, t_ref[...], preferred_element_type=jnp.float32)
    gate = jax.nn.sigmoid(conv + bn_ref[0])                     # (Bt, HWp), EUP
    o_ref[...] = (x * gate[:, None, :].astype(x.dtype)).astype(o_ref.dtype)


def _spatial_gate2_roll_kernel(x_ref, w_ref, colm_ref, rowm_ref, bn_ref, o_ref,
                               *, C, W):
    """Large-map path: separable 7x7 conv via lane rolls (~18 XLU rolls).

    x_ref/o_ref: (Bt, C, HWp) VMEM; w_ref: (98,) SMEM tap weights (BN scale
    folded); colm_ref/rowm_ref: (7, 1, HWp) VMEM host-precomputed border masks
    (zero on padded lanes); bn_ref: (1,) SMEM folded BatchNorm shift.
    """
    x = x_ref[...]
    HWp = x.shape[-1]
    cmax = jnp.max(x, axis=1).astype(jnp.float32)               # (Bt, HWp)
    cmean = jnp.sum(x, axis=1, dtype=jnp.float32) * (1.0 / C)

    # 7 column-shifted + column-masked copies of each pooled channel.
    def col_shift(a, dx):
        ox = dx - PAD
        s = a if ox == 0 else pltpu.roll(a, shift=(-ox) % HWp, axis=1)
        return s * colm_ref[dx]

    sh_max = [col_shift(cmax, dx) for dx in range(K)]
    sh_mean = [col_shift(cmean, dx) for dx in range(K)]

    # Per row offset: 14-tap weighted sum (VALU), one shared row roll (XLU),
    # then the row-validity mask.  Rolls are shared across both pooled channels.
    conv = jnp.zeros(cmax.shape, jnp.float32)
    for dy in range(K):
        oy = dy - PAD
        part = jnp.zeros(cmax.shape, jnp.float32)
        for dx in range(K):
            part = part + w_ref[dy * K + dx] * sh_max[dx] \
                        + w_ref[K * K + dy * K + dx] * sh_mean[dx]
        rolled = part if oy == 0 else pltpu.roll(part, shift=(-(oy * W)) % HWp,
                                                 axis=1)
        conv = conv + rolled * rowm_ref[dy]

    gate = jax.nn.sigmoid(conv + bn_ref[0])                     # (Bt, HWp), EUP
    o_ref[...] = (x * gate[:, None, :].astype(x.dtype)).astype(o_ref.dtype)


# ----------------------------------------------------------------------------
# Wrapper
# ----------------------------------------------------------------------------
def spatial_gate2(x, conv_w, bn_gamma, bn_beta, bn_mean, bn_var,
                  eps=1e-5, conv_impl=None):
    """x: (N, C, H, W); conv_w: (1, 2, 7, 7); bn_*: (1,). Inference mode."""
    N, C, H, W = x.shape
    HW = H * W
    HWp = _round_up(HW, LANES)

    # --- fold BatchNorm (running stats) into conv weights + a scalar shift ---
    scale = float(np.asarray(bn_gamma).reshape(()) /
                  np.sqrt(np.asarray(bn_var).reshape(()) + eps))
    shift = float(np.asarray(bn_beta).reshape(()) -
                  np.asarray(bn_mean).reshape(()) * scale)
    w2 = np.asarray(conv_w, dtype=np.float32).reshape(2, K, K) * scale
    bn_shift = jnp.asarray([shift], dtype=jnp.float32)

    # --- device-aware sizing --------------------------------------------------
    try:
        vmem_cap = int(pltpu.get_tpu_info().vmem_capacity_bytes)
    except Exception:
        vmem_cap = 64 << 20                      # conservative (v7x per-core)

    t_bytes = 2 * HWp * HWp * 4
    if conv_impl is None:
        conv_impl = "matmul" if t_bytes <= min(16 << 20, vmem_cap // 8) else "roll"
    const_bytes = t_bytes if conv_impl == "matmul" else 2 * K * HWp * 4

    budget_total = int(0.7 * vmem_cap)
    block_budget = min(8 << 20,
                       max(1 << 20, (budget_total - 2 * const_bytes - (8 << 20)) // 8))
    elem_bytes = C * HWp * x.dtype.itemsize
    divisors = [d for d in range(1, N + 1) if N % d == 0]
    fits = [d for d in divisors if d * elem_bytes <= block_budget]
    if not fits:
        # TODO(synk): a single image larger than the block budget would need
        # H-tiling with a 3-row halo (and a two-pass channel reduction for
        # C-tiling); fall back to one image per grid step.
        fits = [1]
    multi = [d for d in fits if N // d >= 2]     # keep grid >= 2 (v7x megacore)
    bt = max(multi) if multi else max(fits)
    grid = (N // bt,)
    block_bytes = bt * elem_bytes
    vmem_limit = 8 * block_bytes + 2 * const_bytes + (8 << 20)
    vmem_limit = min(max(vmem_limit, 16 << 20), int(0.9 * vmem_cap))

    # --- lane-dense, 128-padded flat layout -----------------------------------
    x_flat = x.reshape(N, C, HW)
    if HWp != HW:
        x_flat = jnp.pad(x_flat, ((0, 0), (0, 0), (0, HWp - HW)))

    x_spec = pl.BlockSpec((bt, C, HWp), lambda b: (b, 0, 0))
    out_spec = pl.BlockSpec((bt, C, HWp), lambda b: (b, 0, 0))

    if conv_impl == "matmul":
        t_mat = jnp.asarray(_build_toeplitz(w2, H, W, HWp))
        kernel = functools.partial(_spatial_gate2_matmul_kernel, C=C)
        in_specs = [x_spec,
                    pl.BlockSpec((2 * HWp, HWp), lambda b: (0, 0)),
                    pl.BlockSpec(memory_space=pltpu.SMEM)]
        args = (x_flat, t_mat, bn_shift)
    else:
        colm, rowm = _build_masks(H, W, HWp)
        w_tab = jnp.asarray(w2.reshape(-1))      # (98,), BN scale folded in
        kernel = functools.partial(_spatial_gate2_roll_kernel, C=C, W=W)
        in_specs = [x_spec,
                    pl.BlockSpec(memory_space=pltpu.SMEM),
                    pl.BlockSpec((K, 1, HWp), lambda b: (0, 0, 0)),
                    pl.BlockSpec((K, 1, HWp), lambda b: (0, 0, 0)),
                    pl.BlockSpec(memory_space=pltpu.SMEM)]
        args = (x_flat, w_tab, jnp.asarray(colm), jnp.asarray(rowm), bn_shift)

    out_flat = pl.pallas_call(
        kernel,
        out_shape=jax.ShapeDtypeStruct((N, C, HWp), x.dtype),
        grid_spec=pltpu.PrefetchScalarGridSpec(
            num_scalar_prefetch=0,
            grid=grid,
            in_specs=in_specs,
            out_specs=out_spec,
        ),
        compiler_params=pltpu.CompilerParams(
            dimension_semantics=("parallel",),
            vmem_limit_bytes=int(vmem_limit),
        ),
    )(*args)

    if HWp != HW:
        out_flat = out_flat[:, :, :HW]
    return out_flat.reshape(N, C, H, W)


# ----------------------------------------------------------------------------
# Pure-JAX reference and self-test
# ----------------------------------------------------------------------------
def _reference(x, conv_w, bn_gamma, bn_beta, bn_mean, bn_var, eps=1e-5):
    cmax = jnp.max(x, axis=1, keepdims=True)
    cmean = jnp.mean(x, axis=1, keepdims=True)
    pooled = jnp.concatenate([cmax, cmean], axis=1)
    conv = jax.lax.conv_general_dilated(
        pooled, conv_w, window_strides=(1, 1),
        padding=[(PAD, PAD), (PAD, PAD)],
        dimension_numbers=("NCHW", "OIHW", "NCHW"),
        precision=jax.lax.Precision.HIGHEST,
    )
    bn_scale = bn_gamma / jnp.sqrt(bn_var + eps)
    bn_shift = bn_beta - bn_mean * bn_scale
    y = conv * bn_scale.reshape(1, -1, 1, 1) + bn_shift.reshape(1, -1, 1, 1)
    return x * jax.nn.sigmoid(y)


def _check(name, out, ref, atol, rtol):
    if not jnp.allclose(out, ref, atol=atol, rtol=rtol):
        err = float(jnp.max(jnp.abs(out - ref)))
        raise AssertionError(f"{name}: mismatch vs reference (max abs err {err:.3e})")


if __name__ == "__main__":
    key = jax.random.PRNGKey(0)
    k_x1, k_x2, k_w = jax.random.split(key, 3)

    # Conv2d(2, 1, 7, bias=False) + BatchNorm2d(1) with module-default
    # (inference) statistics.
    conv_w = 0.1 * jax.random.normal(k_w, (1, 2, K, K), dtype=jnp.float32)
    bn_gamma = jnp.ones((1,), jnp.float32)
    bn_beta = jnp.zeros((1,), jnp.float32)
    bn_mean = jnp.zeros((1,), jnp.float32)
    bn_var = jnp.ones((1,), jnp.float32)
    params = (conv_w, bn_gamma, bn_beta, bn_mean, bn_var)

    # 1) Small feature map -> MXU Toeplitz path (HW = 256 lanes).
    #    (looser tolerance: the MXU may use bf16 passes for f32 operands)
    x1 = jax.random.normal(k_x1, (2, 4, 16, 16), dtype=jnp.float32)
    ref1 = _reference(x1, *params)
    out1 = jax.block_until_ready(spatial_gate2(x1, *params))
    _check("matmul path", out1, ref1, atol=2e-3, rtol=2e-3)

    # 2) Same input through the separable-roll fallback (large-map path).
    out2 = jax.block_until_ready(spatial_gate2(x1, *params, conv_impl="roll"))
    _check("roll path", out2, ref1, atol=1e-4, rtol=1e-4)

    # 3) Spatial size not a multiple of 128 -> exercises lane padding (matmul).
    x3 = jax.random.normal(k_x2, (3, 5, 14, 12), dtype=jnp.float32)
    ref3 = _reference(x3, *params)
    out3 = jax.block_until_ready(spatial_gate2(x3, *params))
    _check("padded-lane matmul path", out3, ref3, atol=2e-3, rtol=2e-3)

    # 4) Padded lanes through the roll fallback as well.
    out4 = jax.block_until_ready(spatial_gate2(x3, *params, conv_impl="roll"))
    _check("padded-lane roll path", out4, ref3, atol=1e-4, rtol=1e-4)

    print("KERNEL_OK")
</pallas_src>

<mosaic_0001>
module attributes {stable_mosaic.version = 11 : i64} {
  func.func @_spatial_gate2_matmul_kernel(%arg0: i32, %arg1: memref<1x4x256xf32, #tpu.memory_space<vmem>>, %arg2: memref<512x256xf32, #tpu.memory_space<vmem>>, %arg3: memref<1xf32, #tpu.memory_space<smem>>, %arg4: memref<1x4x256xf32, #tpu.memory_space<vmem>>) attributes {dimension_semantics = [#tpu.dimension_semantics<parallel>], iteration_bounds = array<i64: 2>, scalar_prefetch = 0 : i64, scratch_operands = 0 : i64, tpu.core_type = #tpu.core_type<tc>, window_params = [{transform_indices = @transform_0, window_bounds = array<i64: 1, 4, 256>}, {pipeline_mode = #tpu.pipeline_mode<synchronous>, transform_indices = @transform_1, window_bounds = array<i64: 512, 256>}, {transform_indices = @transform_2, window_bounds = array<i64: 1>}, {transform_indices = @transform_3, window_bounds = array<i64: 1, 4, 256>}]} {
    %c0 = arith.constant 0 : index
    %c0_0 = arith.constant 0 : index
    %c0_1 = arith.constant 0 : index
    %0 = vector.load %arg1[%c0, %c0_0, %c0_1] : memref<1x4x256xf32, #tpu.memory_space<vmem>>, vector<1x4x256xf32>
    %cst = arith.constant dense<0xFF800000> : vector<1x256xf32>
    %1 = vector.multi_reduction <maximumf>, %0, %cst [1] : vector<1x4x256xf32> to vector<1x256xf32>
    %cst_2 = arith.constant dense<0.000000e+00> : vector<1x256xf32>
    %2 = vector.multi_reduction <add>, %0, %cst_2 [1] : vector<1x4x256xf32> to vector<1x256xf32>
    %cst_3 = arith.constant 2.500000e-01 : f32
    %3 = vector.broadcast %cst_3 : f32 to vector<1x256xf32>
    %4 = arith.mulf %2, %3 : vector<1x256xf32>
    %5 = tpu.concatenate %1, %4 in 1 : vector<1x256xf32>, vector<1x256xf32> -> vector<1x512xf32>
    %c0_4 = arith.constant 0 : index
    %c0_5 = arith.constant 0 : index
    %6 = vector.load %arg2[%c0_4, %c0_5] : memref<512x256xf32, #tpu.memory_space<vmem>>, vector<512x256xf32>
    %cst_6 = arith.constant dense<0.000000e+00> : vector<1x256xf32>
    %7 = tpu.matmul %5, %6, %cst_6 {dimension_numbers = #tpu.dot_dimension_numbers<[1], [0], [0], [1], [0, 0, 1, 1], [], []>} : vector<1x512xf32>, vector<512x256xf32>, vector<1x256xf32> -> vector<1x256xf32>
    %c0_7 = arith.constant 0 : index
    %8 = memref.load %arg3[%c0_7] : memref<1xf32, #tpu.memory_space<smem>>
    %9 = vector.broadcast %8 : f32 to vector<1x256xf32>
    %10 = arith.addf %7, %9 : vector<1x256xf32>
    %11 = arith.negf %10 : vector<1x256xf32>
    %12 = math.exp %11 : vector<1x256xf32>
    %cst_8 = arith.constant 1.000000e+00 : f32
    %13 = vector.broadcast %cst_8 : f32 to vector<1x256xf32>
    %14 = arith.addf %13, %12 : vector<1x256xf32>
    %15 = arith.divf %13, %14 : vector<1x256xf32>
    %16 = vector.shape_cast %15 : vector<1x256xf32> to vector<1x1x256xf32>
    %17 = vector.broadcast %16 : vector<1x1x256xf32> to vector<1x4x256xf32>
    %18 = arith.mulf %0, %17 : vector<1x4x256xf32>
    %c0_9 = arith.constant 0 : index
    %c0_10 = arith.constant 0 : index
    %c0_11 = arith.constant 0 : index
    %19 = vector.load %arg4[%c0_9, %c0_10, %c0_11] : memref<1x4x256xf32, #tpu.memory_space<vmem>>, vector<1x4x256xf32>
    tpu.vector_store %arg4[%c0_9, %c0_10, %c0_11], %18 {strides = array<i32>} : memref<1x4x256xf32, #tpu.memory_space<vmem>>, vector<1x4x256xf32>,
    return
  }
  func.func @transform_0(%arg0: i32) -> (i32, i32, i32) {
    %c0_i32 = arith.constant 0 : i32
    %c0_i32_0 = arith.constant 0 : i32
    %c0_i32_1 = arith.constant 0 : i32
    return %arg0, %c0_i32, %c0_i32_0 : i32, i32, i32
  }
  func.func @transform_1(%arg0: i32) -> (i32, i32) {
    %c0_i32 = arith.constant 0 : i32
    %c0_i32_0 = arith.constant 0 : i32
    %c0_i32_1 = arith.constant 0 : i32
    return %c0_i32, %c0_i32_0 : i32, i32
  }
  func.func @transform_2(%arg0: i32) -> i32 {
    %c0_i32 = arith.constant 0 : i32
    %c0_i32_0 = arith.constant 0 : i32
    return %c0_i32 : i32
  }
  func.func @transform_3(%arg0: i32) -> (i32, i32, i32) {
    %c0_i32 = arith.constant 0 : i32
    %c0_i32_0 = arith.constant 0 : i32
    %c0_i32_1 = arith.constant 0 : i32
    return %arg0, %c0_i32, %c0_i32_0 : i32, i32, i32
  }
}

</mosaic_0001>

<bundles_post_ra>
// kernel: tpu_custom_call.1
= control target key start
LH: loop header
LB: loop body
LE: loop exit
PB: predicated region body
PF: predicated region fallthrough
CT: control target
= control target key end

     0   :  { %s1043_s0 = inlined_call_operand.hbm [shape: f32[2,4,256], index: 0, kind: input, shape index: {}]   ;;  %s1044_s1 = inlined_call_operand.hbm [shape: f32[512,256], index: 1, kind: input, shape index: {}]   ;;  %s1045_s2 = inlined_call_operand.<no memory space> [shape: f32[1], index: 2, kind: input, shape index: {}]   ;;  %s1046_s3 = inlined_call_operand.hbm [shape: f32[2,4,256], index: 3, kind: output, shape index: {}]  }
   0x1   :  { %8 = sst [smem:[#allocation2]] %s1045_s2 }
   0x2   :  { %9 = vsyncpa [#allocation4], 0 }
   0x3   :  { %11 = vsyncpa [#allocation4 + $0x1], 0 }
   0x4   :  { %12 = vsyncpa [#allocation7], 0 }
   0x5   :  { %13 = vsyncpa [#allocation5], 0 }
   0x6   :  { %15 = vsyncpa [#allocation5 + $0x1], 0  ;;  %s871_s14 = smov 0   ;;  %s873_s15 = smov 0  }
   0x7   :  { %s875_s16 = smov 0   ;;  %s877_s17 = smov 0  }
   0x8 LB: > { %s892_s2 = sadd.s32 4294967295, %s841_s17   ;;  %s631_s18 = sadd.s32 4294967294, %s841_s17   ;;  %s841_s17 = sphi %s877_s17, %s1068_s17   ;;  %s837_s16 = sphi %s875_s16, %s1067_s16   ;;  %s833_s15 = sphi %s873_s15, %s1066_s15   ;;  %s829_s14 = sphi %s871_s14, %s1065_s14  }
   0x9   : > { %p41_p0 = scmp.ne.s32.totalorder %s833_s15, %s829_s14  ;;  %p1047_p1 = scmp.eq.s32.totalorder %s892_s2, 0 }
   0xa   : > { %p113_p3 = scmp.eq.s32.totalorder %s631_s18, 1  ;;  %p632_p5 = scmp.ge.s32.totalorder %s841_s17, 1 }
   0xb   : > { %p901_p4 = por %p1047_p1, %p41_p0  ;;  %p120_p7 = scmp.lt.s32.totalorder %s841_s17, 3 }
   0xc   : > { %p906_p6 = por %p113_p3, %p41_p0  ;;  %s843_s22 = smov [#allocation6]  }
   0xd   : > { %s1051_s19 = scalar_select %p901_p4, 1, 0 }
   0xe   : > { %s1052_s20 = scalar_select %p906_p6, 1, 0 }
   0xf   : > { %p911_p8 = pnand %p632_p5, %p120_p7  ;;  %s132_s23 = sshll.u32 %s843_s22, 4  ;;  %s133_s23 = int_to_ptr.vmem [resolvable:$true] %s132_s23 }
  0x10   : > { %s925_s25 = sadd.s32 1, %s841_s17   ;;  %s28_s26 = sadd.s32 1, %s837_s16 }
  0x11   : > { %s1053_s21 = scalar_select %p911_p8, 1, 0 }
  0x12   : > { %p659_p9 = pneg %p911_p8  ;;  %s25_s27 = ssub.s32 %s841_s17, %s925_s25 }
  0x13   : > { %s730_s28 = scalar_lea.vmem %s133_s23, 16384  ;;  %p738_p5 = scmp.lt.s32.totalorder %s133_s23, %s133_s23 }
  0x14   : > { %p920_p11 = pnand %p659_p9, %p1047_p1  ;;  %p731_p13 = scmp.ne.s32.totalorder %s133_s23, %s730_s28 }
  0x15   : > { %p739_p7 = scmp.lt.s32.totalorder %s730_s28, %s730_s28 }
  0x16   : > { %p721_p12 = pneg %p920_p11 }
  0x17   : > { %p740_p10 = por %p739_p7, %p738_p5 }
  0x18   : > { %p733_p0 = pnand %p731_p13, %p721_p12 }
  0x1a   : > { %p734_p3 = pneg %p733_p0 }
  0x1c   : > { %p741_p2 = pnand %p740_p10, %p734_p3 }
  0x1e   : > { %744 = shalt.err (!%p741_p2)
}
  0x1f   : > { %s844_s29 = smov 256   ;;  %s845_s30 = smov 16  }
  0x20   : > { %662 = dma.hbm_to_vmem [thread:$0]  (!%p920_p11), %s1044_s1, 16384, %s133_s23, [#allocation7], %s844_s29, %s844_s29, %s845_s30  }
  0x21   : > { %p26_p9 = scmp.eq.s32.totalorder %s25_s27, 0  ;;  %p35_p12 = scmp.ne.s32.totalorder %s837_s16, %s833_s15 }
  0x22   : > { %p36_p10 = scmp.eq.s32.totalorder %s841_s17, 0  ;;  %p672_p2 = scmp.lt.s32.totalorder %s841_s17, 2 }
  0x23   : > { %s942_s6 = scalar_select %p26_p9, %s837_s16, %s28_s26  }
  0x24   : > { %p37_p13 = por %p36_p10, %p35_p12  ;;  %p1055_p0 = scmp.eq.s32.totalorder %s892_s2, 1 }
  0x25   : > { %s149_s8 = sand.u32 1, %s837_s16   ;;  %s649_s9 = sshll.u32 %s841_s17, 7 }
  0x26   : > { %p946_p3 = por %p1055_p0, %p35_p12  ;;  %s635_s10 = sshll.u32 %s149_s8, 3 }
  0x27   : > { %s955_s13 = scalar_lea.hbm %s1043_s0, %s649_s9  ;;  %s153_s18 = scalar_lea.vmem [#allocation3], %s635_s10 }
  0x28   : > { %s1056_s7 = scalar_select %p946_p3, 1, 0 }
  0x29   : > { %s161_s22 = sshll.u32 %s153_s18, 4  ;;  %p957_p11 = pnand %p672_p2, %p37_p13  ;;  %s162_s22 = int_to_ptr.vmem [resolvable:$true] %s161_s22 }
  0x2a   : > { %s150_s24 = scalar_lea.sflag [#allocation4], %s149_s8  ;;  %s745_s26 = scalar_lea.hbm %s955_s13, 128 }
  0x2b   : > { %p746_p5 = scmp.ne.s32.totalorder %s955_s13, %s745_s26  ;;  %p747_p7 = pneg %p957_p11 }
  0x2c   : > { %s750_s29 = scalar_lea.hbm %s1043_s0, 256  ;;  %p751_p10 = scmp.lt.s32.totalorder %s955_s13, %s1043_s0 }
  0x2d   : > { %p748_p9 = pnand %p747_p7, %p746_p5  ;;  %p752_p2 = scmp.lt.s32.totalorder %s750_s29, %s745_s26 }
  0x2f   : > { %p749_p12 = pneg %p748_p9  ;;  %p753_p13 = por %p752_p2, %p751_p10 }
  0x31   : > { %p754_p0 = pnand %p753_p13, %p749_p12 }
  0x33   : > { %757 = shalt.err (!%p754_p0)
}
  0x34   : > { %s758_s5 = scalar_lea.vmem %s162_s22, 128  ;;  %s846_s8 = smov [#allocation3]  }
  0x35   : > { %p759_p1 = scmp.ne.s32.totalorder %s162_s22, %s758_s5  ;;  %s763_s9 = sshll.u32 %s846_s8, 4  ;;  %s764_s9 = int_to_ptr.vmem [resolvable:$false] %s763_s9 }
  0x36   : > { %s765_s10 = scalar_lea.vmem %s764_s9, 256  ;;  %p766_p5 = scmp.lt.s32.totalorder %s162_s22, %s764_s9 }
  0x37   : > { %p761_p6 = pnand %p759_p1, %p747_p7  ;;  %p767_p9 = scmp.lt.s32.totalorder %s765_s10, %s758_s5 }
  0x39   : > { %p762_p3 = pneg %p761_p6  ;;  %p768_p4 = por %p767_p9, %p766_p5 }
  0x3b   : > { %p769_p8 = pnand %p768_p4, %p762_p3 }
  0x3d   : > { %772 = shalt.err (!%p769_p8)
}
  0x3e   : > { %666 = dma.hbm_to_vmem [thread:$0]  (!%p957_p11), %s955_s13, 128, %s162_s22, %s150_s24  }
  0x3f   : > { %p1058_p12 = scmp.ne.s32.totalorder %s1053_s21, 0 }
  0x40   : > { %s978_s11 = sand.u32 (!%p1058_p12), 1, %s833_s15   ;;  %p1059_p1 = scmp.ne.s32.totalorder (!%p1058_p12), %s1051_s19, 0 }
  0x41   : > { %170 = sbr.rel (%p1058_p12) target bundleno = 390 (0x186), region = 32  ;;  %s639_s12 = sshll.u32 (!%p1058_p12), %s978_s11, 3 }
  0x42   : > { %s173_s18 = scalar_lea.sflag (!%p1058_p12), [#allocation4], %s978_s11  ;;  %s984_s26 = scalar_lea.vmem (!%p1058_p12), [#allocation3], %s639_s12 }
  0x46   : > { %816 = dma.done.wait (%p1059_p1), %s173_s18, 128  }
  0x47   : > { %818 = vsyncadd (%p1059_p1), %s173_s18, 4294967168  ;;  %p1060_p4 = scmp.eq.s32.totalorder %s892_s2, 0 }
  0x49   : > { %820 = dma.done.wait (%p1060_p4), [#allocation7], 16384   ;;  %p1061_p6 = pmov %p1060_p4 }
  0x4a   : > { %v269_v0 = vld [vmem:[#allocation6 + $0xf8] sm:$0xff]  ;;  %v268_v2 = vld [vmem:[#allocation6 + $0xf0] sm:$0xff]  ;;  %v267_v4 = vld [vmem:[#allocation6 + $0xe8] sm:$0xff]  ;;  %vm207_vm0 = vcmask 1043456   ;;  %s366_s19 = sld [smem:[#allocation2]]  ;;  %s650_s21 = sshll.u32 %s892_s2, 7 }
  0x4b   : > { %822 = vsyncadd (%p1061_p6), [#allocation7], 4294950912  ;;  %v333_v1 = vld [vmem:[#allocation6 + $0x2f8] sm:$0xff]  ;;  %368 = vmatprep.subr.mxu0 %v269_v0  ;;  %v332_v3 = vld [vmem:[#allocation6 + $0x2f0] sm:$0xff]  ;;  %s202_s13 = scalar_lea.vmem [#allocation8], %s639_s12  ;;  %s549_s27 = scalar_lea.hbm %s1046_s3, %s650_s21 }
  0x4c   : > { %439 = vmatprep.subr.mxu1 %v333_v1  ;;  %v331_v5 = vld [vmem:[#allocation6 + $0x2e8] sm:$0xff]  ;;  %369 = vmatpush1.msra.mxu0 %v268_v2  ;;  %v266_v6 = vld [vmem:[#allocation6 + $0xe0] sm:$0xff]  ;;  %v265_v8 = vld [vmem:[#allocation6 + $0xd8] sm:$0xff]  ;;  %s551_s22 = sshll.u32 %s202_s13, 4  ;;  %s537_s28 = scalar_lea.sflag [#allocation5], %s978_s11  ;;  %s552_s22 = int_to_ptr.vmem [resolvable:$true] %s551_s22 }
  0x4d   : > { %440 = vmatpush1.msra.mxu1 %v332_v3  ;;  %v330_v7 = vld [vmem:[#allocation6 + $0x2e0] sm:$0xff]  ;;  %370 = vmatprep.subr.mxu0 %v267_v4  ;;  %v329_v9 = vld [vmem:[#allocation6 + $0x2d8] sm:$0xff]  ;;  %v264_v10 = vld [vmem:[#allocation6 + $0xd0] sm:$0xff]  ;;  %s773_s29 = scalar_lea.vmem %s552_s22, 128  ;;  %p1062_p3 = scmp.ne.s32.totalorder %s1056_s7, 0 }
  0x4e   : > { %441 = vmatprep.subr.mxu1 %v331_v5  ;;  %v328_v11 = vld [vmem:[#allocation6 + $0x2d0] sm:$0xff]  ;;  %371 = vmatpush1.msra.mxu0 %v266_v6  ;;  %v263_v12 = vld [vmem:[#allocation6 + $0xc8] sm:$0xff]  ;;  %v262_v14 = vld [vmem:[#allocation6 + $0xc0] sm:$0xff]  ;;  %p774_p8 = scmp.ne.s32.totalorder %s552_s22, %s773_s29  ;;  %s847_s30 = smov [#allocation8]  }
  0x4f   : > { %442 = vmatpush1.msra.mxu1 %v330_v7  ;;  %v327_v13 = vld [vmem:[#allocation6 + $0x2c8] sm:$0xff]  ;;  %372 = vmatprep.subr.mxu0 %v265_v8  ;;  %v326_v15 = vld [vmem:[#allocation6 + $0x2c0] sm:$0xff]  ;;  %v261_v16 = vld [vmem:[#allocation6 + $0xb8] sm:$0xff]  ;;  %s777_s2 = sshll.u32 %s847_s30, 4  ;;  %s778_s2 = int_to_ptr.vmem [resolvable:$false] %s777_s2 }
  0x50   : > { %443 = vmatprep.subr.mxu1 %v329_v9  ;;  %373 = vmatpush1.msra.mxu0 %v264_v10  ;;  %v325_v17 = vld [vmem:[#allocation6 + $0x2b8] sm:$0xff]  ;;  %v260_v18 = vld [vmem:[#allocation6 + $0xb0] sm:$0xff]  ;;  %v259_v20 = vld [vmem:[#allocation6 + $0xa8] sm:$0xff]  ;;  %p775_p11 = pnand %p774_p8, %p1062_p3  ;;  %s779_s4 = scalar_lea.vmem %s778_s2, 256 }
  0x51   : > { %444 = vmatpush1.msra.mxu1 %v328_v11  ;;  %374 = vmatprep.subr.mxu0 %v263_v12  ;;  %v324_v19 = vld [vmem:[#allocation6 + $0x2b0] sm:$0xff]  ;;  %v323_v21 = vld [vmem:[#allocation6 + $0x2a8] sm:$0xff]  ;;  %v258_v22 = vld [vmem:[#allocation6 + $0xa0] sm:$0xff]  ;;  %p780_p10 = scmp.lt.s32.totalorder %s552_s22, %s778_s2  ;;  %p781_p2 = scmp.lt.s32.totalorder %s779_s4, %s773_s29 }
  0x52   : > { %445 = vmatprep.subr.mxu1 %v327_v13  ;;  %375 = vmatpush1.msra.mxu0 %v262_v14  ;;  %v322_v23 = vld [vmem:[#allocation6 + $0x2a0] sm:$0xff]  ;;  %v257_v24 = vld [vmem:[#allocation6 + $0x98] sm:$0xff]  ;;  %v256_v26 = vld [vmem:[#allocation6 + $0x90] sm:$0xff]  ;;  %p776_p7 = pneg %p775_p11 }
  0x53   : > { %446 = vmatpush1.msra.mxu1 %v326_v15  ;;  %376 = vmatprep.subr.mxu0 %v261_v16  ;;  %v321_v25 = vld [vmem:[#allocation6 + $0x298] sm:$0xff]  ;;  %v320_v27 = vld [vmem:[#allocation6 + $0x290] sm:$0xff]  ;;  %v255_v28 = vld [vmem:[#allocation6 + $0x88] sm:$0xff]  ;;  %p782_p13 = por %p781_p2, %p780_p10 }
  0x54   : > { %447 = vmatprep.subr.mxu1 %v325_v17  ;;  %377 = vmatpush1.msra.mxu0 %v260_v18  ;;  %v319_v29 = vld [vmem:[#allocation6 + $0x288] sm:$0xff]  ;;  %v254_v30 = vld [vmem:[#allocation6 + $0x80] sm:$0xff]  ;;  %v253_v32 = vld [vmem:[#allocation6 + $0x78] sm:$0xff] }
  0x55   : > { %448 = vmatpush1.msra.mxu1 %v324_v19  ;;  %378 = vmatprep.subr.mxu0 %v259_v20  ;;  %v318_v31 = vld [vmem:[#allocation6 + $0x280] sm:$0xff]  ;;  %v317_v33 = vld [vmem:[#allocation6 + $0x278] sm:$0xff]  ;;  %v252_v34 = vld [vmem:[#allocation6 + $0x70] sm:$0xff]  ;;  %p783_p0 = pnand %p782_p13, %p776_p7 }
  0x56   : > { %449 = vmatprep.subr.mxu1 %v323_v21  ;;  %379 = vmatpush1.msra.mxu0 %v258_v22  ;;  %v316_v35 = vld [vmem:[#allocation6 + $0x270] sm:$0xff]  ;;  %v251_v36 = vld [vmem:[#allocation6 + $0x68] sm:$0xff]  ;;  %v250_v38 = vld [vmem:[#allocation6 + $0x60] sm:$0xff] }
  0x57   : > { %450 = vmatpush1.msra.mxu1 %v322_v23  ;;  %380 = vmatprep.subr.mxu0 %v257_v24  ;;  %v315_v37 = vld [vmem:[#allocation6 + $0x268] sm:$0xff]  ;;  %v314_v39 = vld [vmem:[#allocation6 + $0x260] sm:$0xff]  ;;  %v249_v40 = vld [vmem:[#allocation6 + $0x58] sm:$0xff] }
  0x58   : > { %451 = vmatprep.subr.mxu1 %v321_v25  ;;  %381 = vmatpush1.msra.mxu0 %v256_v26  ;;  %v313_v41 = vld [vmem:[#allocation6 + $0x258] sm:$0xff]  ;;  %v248_v42 = vld [vmem:[#allocation6 + $0x50] sm:$0xff]  ;;  %v247_v44 = vld [vmem:[#allocation6 + $0x48] sm:$0xff] }
  0x59   : > { %452 = vmatpush1.msra.mxu1 %v320_v27  ;;  %382 = vmatprep.subr.mxu0 %v255_v28  ;;  %v312_v43 = vld [vmem:[#allocation6 + $0x250] sm:$0xff]  ;;  %v311_v45 = vld [vmem:[#allocation6 + $0x248] sm:$0xff]  ;;  %v246_v46 = vld [vmem:[#allocation6 + $0x40] sm:$0xff] }
  0x5a   : > { %453 = vmatprep.subr.mxu1 %v319_v29  ;;  %383 = vmatpush1.msra.mxu0 %v254_v30  ;;  %v310_v47 = vld [vmem:[#allocation6 + $0x240] sm:$0xff]  ;;  %v245_v48 = vld [vmem:[#allocation6 + $0x38] sm:$0xff]  ;;  %v244_v50 = vld [vmem:[#allocation6 + $0x30] sm:$0xff] }
  0x5b   : > { %454 = vmatpush1.msra.mxu1 %v318_v31  ;;  %384 = vmatprep.subr.mxu0 %v253_v32  ;;  %v309_v49 = vld [vmem:[#allocation6 + $0x238] sm:$0xff]  ;;  %v308_v51 = vld [vmem:[#allocation6 + $0x230] sm:$0xff]  ;;  %v243_v52 = vld [vmem:[#allocation6 + $0x28] sm:$0xff] }
  0x5c   : > { %455 = vmatprep.subr.mxu1 %v317_v33  ;;  %385 = vmatpush1.msra.mxu0 %v252_v34  ;;  %v307_v53 = vld [vmem:[#allocation6 + $0x228] sm:$0xff]  ;;  %v242_v54 = vld [vmem:[#allocation6 + $0x20] sm:$0xff]  ;;  %v241_v56 = vld [vmem:[#allocation6 + $0x18] sm:$0xff] }
  0x5d   : > { %456 = vmatpush1.msra.mxu1 %v316_v35  ;;  %386 = vmatprep.subr.mxu0 %v251_v36  ;;  %v306_v55 = vld [vmem:[#allocation6 + $0x220] sm:$0xff]  ;;  %v305_v57 = vld [vmem:[#allocation6 + $0x218] sm:$0xff]  ;;  %v240_v58 = vld [vmem:[#allocation6 + $0x10] sm:$0xff] }
  0x5e   : > { %457 = vmatprep.subr.mxu1 %v315_v37  ;;  %387 = vmatpush1.msra.mxu0 %v250_v38  ;;  %v304_v59 = vld [vmem:[#allocation6 + $0x210] sm:$0xff]  ;;  %v239_v60 = vld [vmem:[#allocation6 + $0x8] sm:$0xff]  ;;  %v238_v62 = vld [vmem:[#allocation6] sm:$0xff] }
  0x5f   : > { %458 = vmatpush1.msra.mxu1 %v314_v39  ;;  %388 = vmatprep.subr.mxu0 %v249_v40  ;;  %v303_v61 = vld [vmem:[#allocation6 + $0x208] sm:$0xff]  ;;  %v302_v63 = vld [vmem:[#allocation6 + $0x200] sm:$0xff]  ;;  %v301_v0 = vld [vmem:[#allocation6 + $0x1f8] sm:$0xff] }
  0x60   : > { %459 = vmatprep.subr.mxu1 %v313_v41  ;;  %389 = vmatpush1.msra.mxu0 %v248_v42  ;;  %v365_v1 = vld [vmem:[#allocation6 + $0x3f8] sm:$0xff]  ;;  %v300_v2 = vld [vmem:[#allocation6 + $0x1f0] sm:$0xff]  ;;  %v299_v4 = vld [vmem:[#allocation6 + $0x1e8] sm:$0xff] }
  0x61   : > { %460 = vmatpush1.msra.mxu1 %v312_v43  ;;  %390 = vmatprep.subr.mxu0 %v247_v44  ;;  %v364_v3 = vld [vmem:[#allocation6 + $0x3f0] sm:$0xff]  ;;  %v363_v5 = vld [vmem:[#allocation6 + $0x3e8] sm:$0xff]  ;;  %v298_v6 = vld [vmem:[#allocation6 + $0x1e0] sm:$0xff] }
  0x62   : > { %461 = vmatprep.subr.mxu1 %v311_v45  ;;  %391 = vmatpush1.msra.mxu0 %v246_v46  ;;  %v362_v7 = vld [vmem:[#allocation6 + $0x3e0] sm:$0xff]  ;;  %v297_v8 = vld [vmem:[#allocation6 + $0x1d8] sm:$0xff]  ;;  %v296_v10 = vld [vmem:[#allocation6 + $0x1d0] sm:$0xff] }
  0x63   : > { %462 = vmatpush1.msra.mxu1 %v310_v47  ;;  %392 = vmatprep.subr.mxu0 %v245_v48  ;;  %v361_v9 = vld [vmem:[#allocation6 + $0x3d8] sm:$0xff]  ;;  %v360_v11 = vld [vmem:[#allocation6 + $0x3d0] sm:$0xff]  ;;  %v295_v12 = vld [vmem:[#allocation6 + $0x1c8] sm:$0xff] }
  0x64   : > { %463 = vmatprep.subr.mxu1 %v309_v49  ;;  %393 = vmatpush1.msra.mxu0 %v244_v50  ;;  %v359_v13 = vld [vmem:[#allocation6 + $0x3c8] sm:$0xff]  ;;  %v294_v14 = vld [vmem:[#allocation6 + $0x1c0] sm:$0xff]  ;;  %v293_v16 = vld [vmem:[#allocation6 + $0x1b8] sm:$0xff] }
  0x65   : > { %464 = vmatpush1.msra.mxu1 %v308_v51  ;;  %394 = vmatprep.subr.mxu0 %v243_v52  ;;  %v358_v15 = vld [vmem:[#allocation6 + $0x3c0] sm:$0xff]  ;;  %v357_v17 = vld [vmem:[#allocation6 + $0x3b8] sm:$0xff]  ;;  %v292_v18 = vld [vmem:[#allocation6 + $0x1b0] sm:$0xff] }
  0x66   : > { %465 = vmatprep.subr.mxu1 %v307_v53  ;;  %395 = vmatpush1.msra.mxu0 %v242_v54  ;;  %v356_v19 = vld [vmem:[#allocation6 + $0x3b0] sm:$0xff]  ;;  %v291_v20 = vld [vmem:[#allocation6 + $0x1a8] sm:$0xff]  ;;  %v290_v22 = vld [vmem:[#allocation6 + $0x1a0] sm:$0xff] }
  0x67   : > { %466 = vmatpush1.msra.mxu1 %v306_v55  ;;  %396 = vmatprep.subr.mxu0 %v241_v56  ;;  %v355_v21 = vld [vmem:[#allocation6 + $0x3a8] sm:$0xff]  ;;  %v354_v23 = vld [vmem:[#allocation6 + $0x3a0] sm:$0xff]  ;;  %v289_v24 = vld [vmem:[#allocation6 + $0x198] sm:$0xff] }
  0x68   : > { %467 = vmatprep.subr.mxu1 %v305_v57  ;;  %397 = vmatpush1.msra.mxu0 %v240_v58  ;;  %v353_v25 = vld [vmem:[#allocation6 + $0x398] sm:$0xff]  ;;  %v288_v27 = vld [vmem:[#allocation6 + $0x190] sm:$0xff]  ;;  %v287_v32 = vld [vmem:[#allocation6 + $0x188] sm:$0xff] }
  0x69   : > { %468 = vmatpush1.msra.mxu1 %v304_v59  ;;  %398 = vmatprep.subr.mxu0 %v239_v60  ;;  %v995_v26 = vld [vmem:[%s984_s26] sm:$0xff]  ;;  %v351_v33 = vld [vmem:[#allocation6 + $0x388] sm:$0xff]  ;;  %v286_v36 = vld [vmem:[#allocation6 + $0x180] sm:$0xff] }
  0x6a   : > { %469 = vmatprep.subr.mxu1 %v303_v61  ;;  %399 = vmatpush1.msra.mxu0 %v238_v62  ;;  %v352_v28 = vld [vmem:[#allocation6 + $0x390] sm:$0xff]  ;;  %v205_v29 = vcombine.high %v995_v26, %v995_v26  ;;  %v208_v30 = vsel %vm207_vm0, %v995_v26, -inf  ;;  %v222_v31 = vsel %vm207_vm0, %v995_v26, 0.0  ;;  %v350_v37 = vld [vmem:[#allocation6 + $0x380] sm:$0xff]  ;;  %v285_v40 = vld [vmem:[#allocation6 + $0x178] sm:$0xff] }
  0x6b   : > { %470 = vmatpush1.msra.mxu1 %v302_v63  ;;  %400 = vmatprep.subr.mxu0 %v301_v0  ;;  %v209_v34 = vrot.slane %v208_v30, 4  ;;  %v223_v35 = vrot.slane %v222_v31, 4  ;;  %v349_v41 = vld [vmem:[#allocation6 + $0x378] sm:$0xff]  ;;  %v284_v46 = vld [vmem:[#allocation6 + $0x170] sm:$0xff]  ;;  %v283_v48 = vld [vmem:[#allocation6 + $0x168] sm:$0xff] }
  0x6c   : > { %471 = vmatprep.subr.mxu1 %v365_v1  ;;  %401 = vmatpush2.msra.mxu0 %v300_v2  ;;  %v215_v38 = vsel %vm207_vm0, %v205_v29, -inf  ;;  %v229_v39 = vsel %vm207_vm0, %v205_v29, 0.0  ;;  %v348_v47 = vld [vmem:[#allocation6 + $0x370] sm:$0xff]  ;;  %v347_v49 = vld [vmem:[#allocation6 + $0x368] sm:$0xff]  ;;  %v282_v53 = vld [vmem:[#allocation6 + $0x160] sm:$0xff] }
  0x6d   : > { %472 = vmatpush2.msra.mxu1 %v364_v3  ;;  %402 = vmatprep.subr.mxu0 %v299_v4  ;;  %v216_v42 = vrot.slane %v215_v38, 4  ;;  %v230_v43 = vrot.slane %v229_v39, 4  ;;  %v210_v44 = vmax.f32 %v208_v30, %v209_v34  ;;  %v224_v45 = vadd.f32 %v223_v35, %v222_v31  ;;  %v346_v54 = vld [vmem:[#allocation6 + $0x360] sm:$0xff]  ;;  %v281_v55 = vld [vmem:[#allocation6 + $0x158] sm:$0xff]  ;;  %v280_v61 = vld [vmem:[#allocation6 + $0x150] sm:$0xff] }
  0x6e   : > { %473 = vmatprep.subr.mxu1 %v363_v5  ;;  %403 = vmatpush2.msra.mxu0 %v298_v6  ;;  %v345_v56 = vld [vmem:[#allocation6 + $0x358] sm:$0xff]  ;;  %v344_v62 = vld [vmem:[#allocation6 + $0x350] sm:$0xff]  ;;  %v279_v63 = vld [vmem:[#allocation6 + $0x148] sm:$0xff] }
  0x6f   : > { %474 = vmatpush2.msra.mxu1 %v362_v7  ;;  %404 = vmatprep.subr.mxu0 %v297_v8  ;;  %v217_v50 = vmax.f32 %v215_v38, %v216_v42  ;;  %v231_v51 = vadd.f32 %v230_v43, %v229_v39  ;;  %v225_v52 = vrot.slane %v224_v45, 2  ;;  %v211_v59 = vrot.slane %v210_v44, 2  ;;  %v343_v0 = vld [vmem:[#allocation6 + $0x348] sm:$0xff]  ;;  %v278_v3 = vld [vmem:[#allocation6 + $0x140] sm:$0xff]  ;;  %v277_v5 = vld [vmem:[#allocation6 + $0x138] sm:$0xff] }
  0x70   : > { %475 = vmatprep.subr.mxu1 %v361_v9  ;;  %405 = vmatpush2.msra.mxu0 %v296_v10  ;;  %v342_v4 = vld [vmem:[#allocation6 + $0x340] sm:$0xff]  ;;  %v341_v6 = vld [vmem:[#allocation6 + $0x338] sm:$0xff]  ;;  %v276_v10 = vld [vmem:[#allocation6 + $0x130] sm:$0xff] }
  0x71   : > { %476 = vmatpush2.msra.mxu1 %v360_v11  ;;  %406 = vmatprep.subr.mxu0 %v295_v12  ;;  %v218_v57 = vrot.slane %v217_v50, 2  ;;  %v232_v58 = vrot.slane %v231_v51, 2  ;;  %v226_v60 = vadd.f32 %v225_v52, %v224_v45  ;;  %v212_v8 = vmax.f32 %v210_v44, %v211_v59  ;;  %v340_v11 = vld [vmem:[#allocation6 + $0x330] sm:$0xff]  ;;  %v275_v12 = vld [vmem:[#allocation6 + $0x128] sm:$0xff]  ;;  %v334_v30 = vld [vmem:[#allocation6 + $0x300] sm:$0xff] }
  0x72   : > { %477 = vmatprep.subr.mxu1 %v359_v13  ;;  %407 = vmatpush2.msra.mxu0 %v294_v14  ;;  %v339_v13 = vld [vmem:[#allocation6 + $0x328] sm:$0xff] }
  0x73   : > { %478 = vmatpush2.msra.mxu1 %v358_v15  ;;  %408 = vmatprep.subr.mxu0 %v293_v16  ;;  %v219_v1 = vmax.f32 %v217_v50, %v218_v57  ;;  %v233_v2 = vadd.f32 %v232_v58, %v231_v51  ;;  %v227_v9 = vrot.slane %v226_v60, 1  ;;  %v274_v15 = vld [vmem:[#allocation6 + $0x120] sm:$0xff] }
  0x74   : > { %479 = vmatprep.subr.mxu1 %v357_v17  ;;  %409 = vmatpush2.msra.mxu0 %v292_v18  ;;  %v338_v16 = vld [vmem:[#allocation6 + $0x320] sm:$0xff]  ;;  %v273_v18 = vld [vmem:[#allocation6 + $0x118] sm:$0xff] }
  0x75   : > { %480 = vmatpush2.msra.mxu1 %v356_v19  ;;  %410 = vmatprep.subr.mxu0 %v291_v20  ;;  %v234_v7 = vrot.slane %v233_v2, 1  ;;  %v220_v14 = vrot.slane %v219_v1, 1  ;;  %v337_v19 = vld [vmem:[#allocation6 + $0x318] sm:$0xff]  ;;  %v213_v20 = vrot.slane %v212_v8, 1 }
  0x76   : > { %481 = vmatprep.subr.mxu1 %v355_v21  ;;  %411 = vmatpush2.msra.mxu0 %v290_v22  ;;  %v228_v21 = vadd.f32 %v227_v9, %v226_v60  ;;  %v272_v22 = vld [vmem:[#allocation6 + $0x110] sm:$0xff] }
  0x77   : > { %482 = vmatpush2.msra.mxu1 %v354_v23  ;;  %412 = vmatprep.subr.mxu0 %v289_v24  ;;  %v235_v17 = vadd.f32 %v234_v7, %v233_v2  ;;  %v336_v23 = vld [vmem:[#allocation6 + $0x310] sm:$0xff]  ;;  %v271_v24 = vld [vmem:[#allocation6 + $0x108] sm:$0xff]  ;;  %v214_v31 = vmax.f32 %v212_v8, %v213_v20 }
  0x78   : > { %483 = vmatprep.subr.mxu1 %v353_v25  ;;  %413 = vmatpush2.msra.mxu0 %v288_v27  ;;  %v335_v25 = vld [vmem:[#allocation6 + $0x308] sm:$0xff]  ;;  %v221_v27 = vmax.f32 %v219_v1, %v220_v14 }
  0x79   : > { %484 = vmatpush2.msra.mxu1 %v352_v28  ;;  %414 = vmatprep.subr.mxu0 %v287_v32  ;;  %v270_v28 = vld [vmem:[#allocation6 + $0x100] sm:$0xff]  ;;  %v237_v29 = vmul.f32 0.25, %v235_v17  ;;  %v236_v32 = vmul.f32 0.25, %v228_v21 }
  0x7a   : > { %485 = vmatprep.subr.mxu1 %v351_v33  ;;  %415 = vmatpush2.msra.mxu0 %v286_v36  ;;  %v367_v33 = vstv %s366_s19 }
  0x7b   : > { %486 = vmatpush2.msra.mxu1 %v350_v37  ;;  %416 = vmatprep.subr.mxu0 %v285_v40 }
  0x7c   : > { %487 = vmatprep.subr.mxu1 %v349_v41  ;;  %417 = vmatpush2.msra.mxu0 %v284_v46 }
  0x7d   : > { %488 = vmatpush2.msra.mxu1 %v348_v47  ;;  %418 = vmatprep.subr.mxu0 %v283_v48  ;;  %v522_v48 = vlaneseq }
  0x7e   : > { %489 = vmatprep.subr.mxu1 %v347_v49  ;;  %419 = vmatpush2.msra.mxu0 %v282_v53 }
  0x7f   : > { %490 = vmatpush2.msra.mxu1 %v346_v54  ;;  %420 = vmatprep.subr.mxu0 %v281_v55  ;;  %v523_v49 = vshrl.u32 %v522_v48, 7 }
  0x80   : > { %491 = vmatprep.subr.mxu1 %v345_v56  ;;  %421 = vmatpush2.msra.mxu0 %v280_v61 }
  0x81   : > { %492 = vmatpush2.msra.mxu1 %v344_v62  ;;  %422 = vmatprep.subr.mxu0 %v279_v63  ;;  %v524_v50 = vsub.s32 0, %v523_v49 }
  0x82   : > { %493 = vmatprep.subr.mxu1 %v343_v0  ;;  %423 = vmatpush2.msra.mxu0 %v278_v3 }
  0x83   : > { %494 = vmatpush2.msra.mxu1 %v342_v4  ;;  %424 = vmatprep.subr.mxu0 %v277_v5 }
  0x84   : > { %495 = vmatprep.subr.mxu1 %v341_v6  ;;  %425 = vmatpush2.msra.mxu0 %v276_v10 }
  0x85   : > { %496 = vmatpush2.msra.mxu1 %v340_v11  ;;  %426 = vmatprep.subr.mxu0 %v275_v12 }
  0x86   : > { %497 = vmatprep.subr.mxu1 %v339_v13  ;;  %427 = vmatpush2.msra.mxu0 %v274_v15 }
  0x87   : > { %498 = vmatpush2.msra.mxu1 %v338_v16  ;;  %428 = vmatprep.subr.mxu0 %v273_v18 }
  0x88   : > { %499 = vmatprep.subr.mxu1 %v337_v19  ;;  %429 = vmatpush2.msra.mxu0 %v272_v22 }
  0x89   : > { %500 = vmatpush2.msra.mxu1 %v336_v23  ;;  %430 = vmatprep.subr.mxu0 %v271_v24 }
  0x8a   : > { %501 = vmatprep.subr.mxu1 %v335_v25  ;;  %431 = vmatpush2.msra.mxu0 %v270_v28 }
  0x8b   : > { %432 = vmatprep.mubr.f32.mxu0 %v221_v27  ;;  %502 = vmatpush2.msra.mxu1 %v334_v30 }
  0x8c   : > { %503 = vmatprep.mubr.f32.mxu1 %v237_v29  ;;  %433 = vmatmul.mubr.f32.vlgmr.msra.gmra.mxu0 %v214_v31 }
  0x8d   : > { %504 = vmatmul.mubr.f32.vlgmr.msra.gmra.mxu1 %v236_v32 }
 0x14c   : > { %v434_v34 = vpop.f32.mrf.mxu0 }
 0x14d   : > { %v505_v35 = vpop.f32.mrf.mxu1  ;;  %v435_v36 = vadd.f32 %v434_v34, %v367_v33 }
 0x14e   : > { %v436_v37 = vpop.f32.mrf.mxu0 }
 0x14f   : > { %v506_v38 = vadd.f32 %v505_v35, %v435_v36  ;;  %v437_v39 = vadd.f32 %v436_v37, %v367_v33  ;;  %v507_v40 = vpop.f32.mrf.mxu1 }
 0x151   : > { %v642_v41 = vmul.f32 -1.442695, %v506_v38  ;;  %v508_v42 = vadd.f32 %v507_v40, %v437_v39 }
 0x153   : > { %711 = vpow2.f32 %v642_v41  ;;  %v643_v43 = vmul.f32 -1.442695, %v508_v42 }
 0x155   : > { %713 = vpow2.f32 %v643_v43 }
 0x160   : > { %v712_v44 = vpop.eup %711 }
 0x161   : > { %v516_v45 = vadd.f32 1.0, %v712_v44 }
 0x162   : > { %v714_v46 = vpop.eup %713 }
 0x163   : > { %715 = vrcp.f32 %v516_v45  ;;  %v517_v47 = vadd.f32 1.0, %v714_v46 }
 0x165   : > { %717 = vrcp.f32 %v517_v47 }
 0x170   : > { %v716_v51 = vpop.eup %715 }
 0x171   : > { %v525_v53 = vrot.slane %v716_v51, %v524_v50 }
 0x172   : > { %v718_v52 = vpop.eup %717 }
 0x173   : > { %v529_v54 = vrot.slane %v718_v52, %v524_v50 }
 0x175   : > { %v532_v55 = vcombine.low %v525_v53, %v529_v54 }
 0x177   : > { %v534_v56 = vmul.f32 %v532_v55, %v995_v26 }
 0x179   : > { %535 = vst [vmem:[%s202_s13] sm:$0xff] %v534_v56 }
 0x17a   : > { %786 = shalt.err (!%p783_p0)
}
 0x17b   : > { %s787_s5 = scalar_lea.hbm %s549_s27, 128  ;;  %s791_s10 = scalar_lea.hbm %s1046_s3, 256 }
 0x17c   : > { %p788_p5 = scmp.ne.s32.totalorder %s549_s27, %s787_s5  ;;  %p792_p1 = scmp.lt.s32.totalorder %s549_s27, %s1046_s3 }
 0x17d   : > { %p793_p4 = scmp.lt.s32.totalorder %s791_s10, %s787_s5 }
 0x17e   : > { %p789_p9 = pnand %p788_p5, %p1062_p3 }
 0x17f   : > { %p794_p6 = por %p793_p4, %p792_p1 }
 0x180   : > { %p790_p12 = pneg %p789_p9 }
 0x182   : > { %p795_p8 = pnand %p794_p6, %p790_p12 }
 0x184   : > { %798 = shalt.err (!%p795_p8)
}
 0x185   : > { %657 = dma.vmem_to_hbm [thread:$0]  (%p1062_p3), %s552_s22, 128, %s549_s27, %s537_s28  }
 0x186 PF: > { %s563_s18 = sand.u32 1, %s829_s14   ;;  %p1063_p11 = scmp.ne.s32.totalorder %s1052_s20, 0 }
 0x187   : > { %p1064_p7 = scmp.ge.s32.totalorder %s841_s17, 2  ;;  %s564_s26 = scalar_lea.sflag [#allocation5], %s563_s18 }
 0x189   : > { %p668_p10 = pnand %p1064_p7, %p1063_p11 }
 0x18b   : > { %p669_p2 = pneg %p668_p10 }
 0x18d   : > { %824 = dma.done.wait (%p669_p2), %s564_s26, 128  }
 0x18e   : > { %826 = vsyncadd (%p669_p2), %s564_s26, 4294967168  ;;  %p18_p13 = scmp.ge.s32.totalorder %s925_s25, 4   ;;  %s1065_s14 = smov %s833_s15 }
 0x18f   : > { %s1066_s15 = smov %s837_s16  ;;  %s1067_s16 = smov %s942_s6 }
 0x190   : > { %s1068_s17 = smov %s925_s25  ;;  %20 = sbr.rel (!%p18_p13) target bundleno = 8 (0x8), region = 81 }
 0x195   :  { %569 = vsyncpa [#allocation4], 1 }
 0x196   :  { %571 = vsyncpa [#allocation4 + $0x1], 1 }
 0x197   :  { %572 = vsyncpa [#allocation7], 1 }
 0x198   :  { %573 = vsyncpa [#allocation5], 1 }
 0x199   :  { %575 = vsyncpa [#allocation5 + $0x1], 1 }

</bundles_post_ra>
